<compile_context>
chip_gen: v7x
topology: tpu7x:2x2x1
jax: 0.10.0
libtpu: 0.0.40
codegen_flags: <defaults>
</compile_context>

<pallas_src>
import functools

import numpy as np
import jax
import jax.numpy as jnp
from jax.experimental import pallas as pl
from jax.experimental.pallas import tpu as pltpu


# ----------------------------- in-kernel math --------------------------------
def _fast_recip(d):
    # EUP approx reciprocal + one Newton step on the VPU (error ~ eps^2).
    r = pl.reciprocal(d, approx=True)
    return r * (2.0 - d * r)


def _mish(x):
    # mish(x) = x * tanh(softplus(x)) = x * (u^2-1)/(u^2+1), u = 1 + e^x,
    # evaluated with a = e^{-|x|} for stability: 1 exp + 1 approx recip.
    a = jnp.exp(-jnp.abs(x))
    n = jnp.where(x >= 0, 1.0 + 2.0 * a, a * (a + 2.0))
    d = n + jnp.where(x >= 0, 2.0 * a * a, 2.0)
    return x * n * _fast_recip(d)


def _ref_mish(x):
    sp = jnp.maximum(x, 0.0) + jnp.log(1.0 + jnp.exp(-jnp.abs(x)))
    return x * jnp.tanh(sp)


_CONST = dict(pipeline_mode=pl.Buffered(1))   # single-buffer grid-invariant operands


# ------------------------------ fused 3-layer MLP ----------------------------
def _mlp3_kernel(x_ref, w0_ref, b0_ref, w1_ref, b1_ref, w2_ref, b2_ref, o_ref,
                 *, activation, total_rows):
    x = x_ref[...]
    tm = x.shape[0]
    if total_rows is not None:   # static: last block is partial -> zero OOB rows
        row = (jax.lax.broadcasted_iota(jnp.int32, (tm, 1), 0)
               + pl.program_id(0) * tm)
        x = jnp.where(row < total_rows, x, 0.0)

    act = _mish if activation == "mish" else (lambda v: jnp.maximum(v, 0.0))
    h = act(jnp.dot(x, w0_ref[...].astype(jnp.float32),
                    preferred_element_type=jnp.float32) + b0_ref[...])
    h = act(jnp.dot(h, w1_ref[...].astype(jnp.float32),
                    preferred_element_type=jnp.float32) + b1_ref[...])
    o_ref[...] = (jnp.dot(h, w2_ref[...].astype(jnp.float32),
                          preferred_element_type=jnp.float32) + b2_ref[...])


def pallas_mlp3(x, layers, activation="mish", row_tile=16):
    """Fused 3-layer MLP: x (M,K) -> (M,N); intermediates stay in VMEM.

    Weights may be bf16 (upcast in-kernel, halves HBM weight traffic).
    No input padding: the M remainder is masked in-kernel.
    """
    (w0, b0), (w1, b1), (w2, b2) = layers
    M, K = x.shape
    H0, H1, N = w0.shape[1], w1.shape[1], w2.shape[1]
    TM = M if M <= row_tile else row_tile
    nblk = pl.cdiv(M, TM)
    total_rows = None if M % TM == 0 else M
    return pl.pallas_call(
        functools.partial(_mlp3_kernel, activation=activation,
                          total_rows=total_rows),
        out_shape=jax.ShapeDtypeStruct((M, N), jnp.float32),
        grid=(nblk,),
        in_specs=[
            pl.BlockSpec((TM, K), lambda i: (i, 0)),
            pl.BlockSpec((K, H0), lambda i: (0, 0), **_CONST),
            pl.BlockSpec((1, H0), lambda i: (0, 0), **_CONST),
            pl.BlockSpec((H0, H1), lambda i: (0, 0), **_CONST),
            pl.BlockSpec((1, H1), lambda i: (0, 0), **_CONST),
            pl.BlockSpec((H1, N), lambda i: (0, 0), **_CONST),
            pl.BlockSpec((1, N), lambda i: (0, 0), **_CONST),
        ],
        out_specs=pl.BlockSpec((TM, N), lambda i: (i, 0)),
        compiler_params=pltpu.CompilerParams(dimension_semantics=("parallel",)),
    )(x, w0, b0, w1, b1, w2, b2)


# --------------------- fused BEV conv3x3 + ReLU + flatten-Linear -------------
def _bev_kernel(x_ref, wconv_ref, bconv_ref, wlin_ref, o_ref,
                *, TH, W, Cin, Cmid):
    i = pl.program_id(0)
    row0 = pl.multiple_of(i * TH, TH)
    # 9 accumulating K=Cin taps (no im2col patch buffer).
    acc = jnp.zeros((TH * W, Cmid), jnp.float32)
    for kh in range(3):
        for kw in range(3):
            tap = x_ref[pl.ds(row0 + kh, TH), pl.ds(kw, W), :]
            tap = tap.reshape(TH * W, Cin)
            wt = wconv_ref[pl.ds((kh * 3 + kw) * Cin, Cin), :]
            acc = acc + jnp.dot(tap, wt, preferred_element_type=jnp.float32)
    conv = jnp.maximum(acc + bconv_ref[...], 0.0)          # (TH*W, Cmid)
    # Partial flatten-Linear contribution for this H tile (wlin streamed in K).
    flat = conv.reshape(1, TH * W * Cmid)
    o_ref[...] = jnp.dot(flat, wlin_ref[...].astype(jnp.float32),
                         preferred_element_type=jnp.float32).reshape(1, 1, -1)


def pallas_bev_encode(x_pad_hwc, wconv, bconv, wlin, blin, H, W, row_tile=4):
    """conv3x3(stride1,pad1)+ReLU+Flatten+Linear, H-tiled; wlin weight-streamed.

    Grid is 'parallel' over H tiles (>=2 steps -> both v7x TensorCores); each
    tile writes a (1, D_BEV) partial that is reduced outside.
    """
    Cin, Cmid, D = x_pad_hwc.shape[-1], wconv.shape[-1], wlin.shape[-1]
    TH = row_tile if H % row_tile == 0 else H
    NH = H // TH
    partials = pl.pallas_call(
        functools.partial(_bev_kernel, TH=TH, W=W, Cin=Cin, Cmid=Cmid),
        out_shape=jax.ShapeDtypeStruct((NH, 1, D), jnp.float32),
        grid=(NH,),
        in_specs=[
            pl.BlockSpec((H + 2, W + 2, Cin), lambda i: (0, 0, 0), **_CONST),
            pl.BlockSpec((9 * Cin, Cmid), lambda i: (0, 0), **_CONST),
            pl.BlockSpec((1, Cmid), lambda i: (0, 0), **_CONST),
            pl.BlockSpec((TH * W * Cmid, D), lambda i: (i, 0)),   # streamed
        ],
        out_specs=pl.BlockSpec((1, 1, D), lambda i: (i, 0, 0)),
        compiler_params=pltpu.CompilerParams(dimension_semantics=("parallel",)),
    )(x_pad_hwc, wconv, bconv, wlin)
    return jnp.sum(partials, axis=0) + blin                 # (1, D_BEV)


# ---------------- MoE head: gating experts + masked softmax + aggregation ----
def _moe_head_kernel(agent_ref, mask_ref, bev_ref, map_ref,
                     gw0a_ref, gw0b_ref, gw0m_ref, gb0_ref,
                     gw1_ref, gb1_ref, gw2_ref, gb2_ref,
                     comb_ref, *, num_modes):
    agent = agent_ref[0]        # (Kmax, D_FEAT)
    maskk = mask_ref[0]         # (Kmax, 1); 1.0 = valid prediction row
    bev = bev_ref[...]          # (1, D_BEV)
    mp = map_ref[0]             # (1, D_MAP)

    # 6 gating experts; layer-0 weight split into agent/bev/map row blocks so
    # cav_emb (concat) is never materialized.
    cols = []
    for m in range(num_modes):
        h = (jnp.dot(agent, gw0a_ref[m], preferred_element_type=jnp.float32)
             + jnp.dot(bev, gw0b_ref[m], preferred_element_type=jnp.float32)
             + jnp.dot(mp, gw0m_ref[m], preferred_element_type=jnp.float32)
             + gb0_ref[m])
        h = _mish(h)
        h = _mish(jnp.dot(h, gw1_ref[m],
                          preferred_element_type=jnp.float32) + gb1_ref[m])
        cols.append(jnp.dot(h, gw2_ref[m],
                            preferred_element_type=jnp.float32) + gb2_ref[m])
    logits = jnp.concatenate(cols, axis=-1)                 # (Kmax, num_modes)

    # masked softmax over K (dim 0), per mode
    logits = jnp.where(maskk > 0.5, logits, -1e30)
    mmax = jnp.max(logits, axis=0, keepdims=True)
    e = jnp.exp(logits - mmax) * maskk
    denom = jnp.maximum(jnp.sum(e, axis=0, keepdims=True), 1e-30)
    probs = e * _fast_recip(denom)

    # gated aggregation: (num_modes, d_feat)
    comb_ref[0] = jnp.dot(probs.T, agent, preferred_element_type=jnp.float32)


def pallas_moe_head(agent_embs, mask, bev_emb, map_emb, gating, num_modes):
    N, Kmax, D = agent_embs.shape
    gw0a, gw0b, gw0m, gb0, gw1, gb1, gw2, gb2 = gating
    D_BEV, D_MAP = gw0b.shape[1], gw0m.shape[1]
    map3 = map_emb.reshape(N, 1, D_MAP)
    return pl.pallas_call(
        functools.partial(_moe_head_kernel, num_modes=num_modes),
        out_shape=jax.ShapeDtypeStruct((N, num_modes, D), jnp.float32),
        grid=(N,),
        in_specs=[
            pl.BlockSpec((1, Kmax, D), lambda i: (i, 0, 0)),
            pl.BlockSpec((1, Kmax, 1), lambda i: (i, 0, 0)),
            pl.BlockSpec((1, D_BEV), lambda i: (0, 0), **_CONST),
            pl.BlockSpec((1, 1, D_MAP), lambda i: (i, 0, 0)),
            pl.BlockSpec(gw0a.shape, lambda i: (0, 0, 0), **_CONST),
            pl.BlockSpec(gw0b.shape, lambda i: (0, 0, 0), **_CONST),
            pl.BlockSpec(gw0m.shape, lambda i: (0, 0, 0), **_CONST),
            pl.BlockSpec(gb0.shape, lambda i: (0, 0, 0), **_CONST),
            pl.BlockSpec(gw1.shape, lambda i: (0, 0, 0), **_CONST),
            pl.BlockSpec(gb1.shape, lambda i: (0, 0, 0), **_CONST),
            pl.BlockSpec(gw2.shape, lambda i: (0, 0, 0), **_CONST),
            pl.BlockSpec(gb2.shape, lambda i: (0, 0, 0), **_CONST),
        ],
        out_specs=pl.BlockSpec((1, num_modes, D), lambda i: (i, 0, 0)),
        compiler_params=pltpu.CompilerParams(dimension_semantics=("parallel",)),
    )(agent_embs, mask, bev_emb, map3,
      gw0a, gw0b, gw0m, gb0, gw1, gb1, gw2, gb2)


# -------------------------- parameters (deterministic) -----------------------
class Config:
    # Small demo shapes consistent with the module structure (original uses
    # 512/128, 256x48x176 BEV, 49x256 map).  num_modes must be 6.
    NUM_MODES = 6
    NUM_TIMESTAMPS = 8
    NUM_STATES = 5
    D_FEAT = 64
    BEV_CIN = 16
    BEV_CMID = 8
    BEV_H = 8
    BEV_W = 12
    D_BEV = 32
    MAP_P = 8
    MAP_C = 16
    D_MAP = 32


def init_linear_params(key, in_dim, out_dim):
    kw, kb = jax.random.split(key)
    scale = 1.0 / np.sqrt(in_dim)
    w = jax.random.uniform(kw, (in_dim, out_dim), jnp.float32, -scale, scale)
    b = jax.random.uniform(kb, (1, out_dim), jnp.float32, -scale, scale)
    return w, b


def init_mlp_params(key, in_dim, out_dim, num_layers=3):
    keys = jax.random.split(key, num_layers)
    params = []
    for i in range(num_layers):
        if i == num_layers - 1:
            params.append(init_linear_params(keys[i], in_dim, out_dim))
        else:
            params.append(init_linear_params(keys[i], in_dim, in_dim))
    return params


def init_model_params(key, cfg):
    """Raw parameters in PyTorch-like layouts."""
    ks = jax.random.split(key, 6)
    p = {}
    p["feature_encoder"] = init_mlp_params(
        ks[0], cfg.NUM_TIMESTAMPS * cfg.NUM_STATES, cfg.D_FEAT)
    kw, kb, klw, klb = jax.random.split(ks[1], 4)
    cscale = 1.0 / np.sqrt(cfg.BEV_CIN * 9)
    conv_w = jax.random.uniform(kw, (cfg.BEV_CMID, cfg.BEV_CIN, 3, 3),
                                jnp.float32, -cscale, cscale)
    conv_b = jax.random.uniform(kb, (cfg.BEV_CMID,), jnp.float32, -cscale, cscale)
    lin_in = cfg.BEV_CMID * cfg.BEV_H * cfg.BEV_W          # flatten order (C,H,W)
    lscale = 1.0 / np.sqrt(lin_in)
    lin_w = jax.random.uniform(klw, (lin_in, cfg.D_BEV), jnp.float32, -lscale, lscale)
    lin_b = jax.random.uniform(klb, (1, cfg.D_BEV), jnp.float32, -lscale, lscale)
    p["bev_encoder"] = (conv_w, conv_b, lin_w, lin_b)
    p["map_encoder"] = init_mlp_params(ks[2], cfg.MAP_P * cfg.MAP_C, cfg.D_MAP)
    p["trajectory_decoder"] = init_mlp_params(ks[3], cfg.D_FEAT,
                                              cfg.NUM_TIMESTAMPS * cfg.NUM_STATES)
    gate_in = cfg.D_FEAT + cfg.D_BEV + cfg.D_MAP
    gkeys = jax.random.split(ks[4], cfg.NUM_MODES)
    p["gating"] = [init_mlp_params(gkeys[m], gate_in, 1) for m in range(cfg.NUM_MODES)]
    p["score_estimator"] = init_mlp_params(ks[5], cfg.NUM_MODES * cfg.D_FEAT,
                                           cfg.NUM_MODES)
    return p


def prepare_params(raw, cfg):
    """One-time layout plumbing: conv weight -> (9*Cin, Cmid), flatten-Linear
    weight permuted from PyTorch (C,H,W) flatten order to (H,W,C), gating
    experts stacked + layer-0 split into agent/bev/map row blocks, and the
    weight-streaming-bound matrices cast to bf16 (upcast in-kernel)."""
    H, W, Cin, Cmid = cfg.BEV_H, cfg.BEV_W, cfg.BEV_CIN, cfg.BEV_CMID
    D, D_BEV = cfg.D_FEAT, cfg.D_BEV
    conv_w, conv_b, lin_w, lin_b = raw["bev_encoder"]
    wconv = jnp.transpose(conv_w, (2, 3, 1, 0)).reshape(9 * Cin, Cmid)
    bconv = conv_b.reshape(1, Cmid)
    wlin = (lin_w.reshape(Cmid, H, W, D_BEV).transpose(1, 2, 0, 3)
                 .reshape(H * W * Cmid, D_BEV).astype(jnp.bfloat16))

    g = raw["gating"]
    gw0 = jnp.stack([gm[0][0] for gm in g])                 # (6, G, G)
    gating = (gw0[:, :D, :], gw0[:, D:D + D_BEV, :], gw0[:, D + D_BEV:, :],
              jnp.stack([gm[0][1] for gm in g]),
              jnp.stack([gm[1][0] for gm in g]), jnp.stack([gm[1][1] for gm in g]),
              jnp.stack([gm[2][0] for gm in g]), jnp.stack([gm[2][1] for gm in g]))

    def bf16_stream(layers):
        (w0, b0), (w1, b1), (w2, b2) = layers
        return [(w0.astype(jnp.bfloat16), b0),
                (w1.astype(jnp.bfloat16), b1), (w2, b2)]

    return dict(feature_encoder=raw["feature_encoder"],
                bev_encoder=(wconv, bconv, wlin, lin_b),
                map_encoder=bf16_stream(raw["map_encoder"]),
                trajectory_decoder=raw["trajectory_decoder"],
                gating=gating,
                score_estimator=bf16_stream(raw["score_estimator"]))


# ----------------------- host-side (cached) index plan -----------------------
_INDEX_PLAN_CACHE = {}


def _build_index_plan(center_objects_id_to_aggregate, num_modes):
    key = (tuple(tuple(np.asarray(ids).tolist())
                 for ids in center_objects_id_to_aggregate), num_modes)
    hit = _INDEX_PLAN_CACHE.get(key)
    if hit is not None:
        return hit
    rows_by_id, base = {}, 0
    for ids in center_objects_id_to_aggregate:
        ids = np.asarray(ids).tolist()
        for o, oid in enumerate(ids):
            rows_by_id.setdefault(oid, []).extend(
                range(base + o * num_modes, base + (o + 1) * num_modes))
        base += len(ids) * num_modes
    ego_ids = np.asarray(center_objects_id_to_aggregate[0]).tolist()
    n_ego = len(ego_ids)
    kmax = max(len(rows_by_id[oid]) for oid in ego_ids)
    # Bucket Kmax (in units of num_modes) to a power of two so varying CAV
    # counts reuse the same compiled kernels instead of retracing.
    ncav_max = max(1, int(2 ** int(np.ceil(np.log2(kmax // num_modes)))))
    kmax = ncav_max * num_modes
    idx_np = np.zeros((n_ego, kmax), np.int32)
    msk_np = np.zeros((n_ego, kmax, 1), np.float32)
    for i, oid in enumerate(ego_ids):
        r = rows_by_id[oid]
        idx_np[i, :len(r)] = r
        msk_np[i, :len(r), 0] = 1.0
    plan = (jnp.asarray(idx_np), jnp.asarray(msk_np), n_ego, kmax)
    _INDEX_PLAN_CACHE[key] = plan
    return plan


# ------------------------------ fast (Pallas) forward ------------------------
def motion_aggregator_moev4_forward(prep, cfg, features_to_aggregate, pred_scores,
                                    bev_features, batch_sample_count,
                                    center_objects_id_to_aggregate,
                                    map_polylines_feature, map_valid_mask,
                                    map_polylines_center):
    # pred_scores, batch_sample_count, map_polylines_center are unused by the
    # reference forward as well; kept for signature fidelity.
    num_modes, T, S, D = cfg.NUM_MODES, cfg.NUM_TIMESTAMPS, cfg.NUM_STATES, cfg.D_FEAT

    idx, msk, n_ego, kmax = _build_index_plan(center_objects_id_to_aggregate,
                                              num_modes)

    # 1) all CAV trajectory embeddings in ONE fused-MLP call
    all_flat = jnp.concatenate(
        [cf.reshape(cf.shape[0] * num_modes, T * S) for cf in features_to_aggregate],
        axis=0)
    all_emb = pallas_mlp3(all_flat, prep["feature_encoder"], activation="mish")

    # 2) BEV embedding: fused conv+ReLU+flatten+Linear (H-tiled, weight-streamed)
    wconv, bconv, wlin, blin = prep["bev_encoder"]
    x_hwc = jnp.transpose(bev_features[0], (1, 2, 0))       # NCHW -> (H, W, Cin)
    x_pad = jnp.pad(x_hwc, ((1, 1), (1, 1), (0, 0)))
    bev_emb = pallas_bev_encode(x_pad, wconv, bconv, wlin, blin,
                                cfg.BEV_H, cfg.BEV_W)        # (1, D_BEV)

    # 3) map embeddings for ALL ego objects in one fused-MLP call
    masked_map = (map_polylines_feature[0] *
                  map_valid_mask[0][..., None]).reshape(n_ego, -1)
    map_emb = pallas_mlp3(masked_map, prep["map_encoder"], activation="mish")

    # 4) gather agent embeddings per ego object; gating/softmax/aggregation
    #    (cav_emb never materialized — bev/map partials summed in-kernel)
    # TODO(synk): the gather could move in-kernel via scalar-prefetched idx.
    agent_embs = jnp.take(all_emb, idx.reshape(-1), axis=0).reshape(n_ego, kmax, D)
    combined = pallas_moe_head(agent_embs, msk, bev_emb, map_emb,
                               prep["gating"], num_modes)    # (N, 6, D)

    # 5) scores + trajectories via batched fused MLPs (score MLP no longer
    #    lives inside the per-object grid)
    final_scores = pallas_mlp3(combined.reshape(n_ego, num_modes * D),
                               prep["score_estimator"], activation="mish")
    traj = pallas_mlp3(combined.reshape(n_ego * num_modes, D),
                       prep["trajectory_decoder"], activation="mish")
    return traj.reshape(n_ego, num_modes, T, S), final_scores


# --------------------- faithful pure-JAX reference (loop) --------------------
def reference_forward(raw, cfg, features_to_aggregate, pred_scores, bev_features,
                      batch_sample_count, center_objects_id_to_aggregate,
                      map_polylines_feature, map_valid_mask, map_polylines_center):
    num_modes, T, S = cfg.NUM_MODES, cfg.NUM_TIMESTAMPS, cfg.NUM_STATES

    def mlp(x, layers):
        n = len(layers)
        for i, (w, b) in enumerate(layers):
            x = x @ w + b
            if i != n - 1:
                x = _ref_mish(x)
        return x

    conv_w, conv_b, lin_w, lin_b = raw["bev_encoder"]
    y = jax.lax.conv_general_dilated(bev_features, conv_w, (1, 1), "SAME",
                                     dimension_numbers=("NCHW", "OIHW", "NCHW"))
    y = jnp.maximum(y + conv_b[None, :, None, None], 0.0)
    bev_emb = y.reshape(1, -1) @ lin_w + lin_b               # (1, D_BEV)

    predictions = {}
    for cav_feature, ids in zip(features_to_aggregate, center_objects_id_to_aggregate):
        n_obj = cav_feature.shape[0]
        emb = mlp(cav_feature.reshape(n_obj * num_modes, T * S),
                  raw["feature_encoder"])
        rep_ids = np.repeat(np.asarray(ids), num_modes).tolist()
        for r, oid in enumerate(rep_ids):
            predictions.setdefault(oid, []).append(emb[r])

    ego_map = map_polylines_feature[0]
    ego_mask = map_valid_mask[0]
    combs, scs = [], []
    for idx_, oid in enumerate(np.asarray(center_objects_id_to_aggregate[0]).tolist()):
        agent = jnp.stack(predictions[oid], axis=0)          # (K, D_FEAT)
        K = agent.shape[0]
        bev_rep = jnp.tile(bev_emb, (K, 1))
        memb = mlp((ego_map[idx_] * ego_mask[idx_][:, None]).reshape(1, -1),
                   raw["map_encoder"])
        mrep = jnp.tile(memb, (K, 1))
        cav = jnp.concatenate([agent, bev_rep, mrep], axis=-1)
        per_mode = []
        for m in range(num_modes):
            g = mlp(cav, raw["gating"][m])                   # (K, 1)
            g = jax.nn.softmax(g, axis=0)
            per_mode.append((g * agent).sum(axis=0))
        comb = jnp.stack(per_mode, axis=0)
        combs.append(comb)
        scs.append(mlp(comb.reshape(1, -1), raw["score_estimator"])[0])
    fe = jnp.stack(combs, axis=0)
    traj = mlp(fe.reshape(-1, cfg.D_FEAT), raw["trajectory_decoder"])
    n_ego = features_to_aggregate[0].shape[0]
    return traj.reshape(n_ego, num_modes, T, S), jnp.stack(scs, axis=0)


# ------------------------------------ main ------------------------------------
if __name__ == "__main__":
    cfg = Config()
    key = jax.random.PRNGKey(0)
    kparams, kdata = jax.random.split(key)
    raw_params = init_model_params(kparams, cfg)
    prep_params = prepare_params(raw_params, cfg)

    # Two CAVs.  Ego (first) observes ids [10, 20, 30]; the helper CAV observes
    # [20, 40] -> object 20 aggregates 12 embeddings, objects 10/30 only 6.
    kd1, kd2, kbev, kmap1, kmap2, kmask = jax.random.split(kdata, 6)
    feats_ego = jax.random.normal(
        kd1, (3, cfg.NUM_MODES, cfg.NUM_TIMESTAMPS, cfg.NUM_STATES), jnp.float32)
    feats_cav2 = jax.random.normal(
        kd2, (2, cfg.NUM_MODES, cfg.NUM_TIMESTAMPS, cfg.NUM_STATES), jnp.float32)
    features_to_aggregate = [feats_ego, feats_cav2]
    pred_scores = [jnp.zeros((3, cfg.NUM_MODES), jnp.float32),
                   jnp.zeros((2, cfg.NUM_MODES), jnp.float32)]      # unused
    bev_features = jax.random.normal(
        kbev, (1, cfg.BEV_CIN, cfg.BEV_H, cfg.BEV_W), jnp.float32)  # NCHW
    center_ids = [np.array([10, 20, 30]), np.array([20, 40])]
    map_feat = [jax.random.normal(kmap1, (3, cfg.MAP_P, cfg.MAP_C), jnp.float32),
                jax.random.normal(kmap2, (2, cfg.MAP_P, cfg.MAP_C), jnp.float32)]
    map_mask = [(jax.random.uniform(kmask, (3, cfg.MAP_P)) > 0.3).astype(jnp.float32),
                jnp.ones((2, cfg.MAP_P), jnp.float32)]
    map_center = [jnp.zeros((3, cfg.MAP_P, 3), jnp.float32),
                  jnp.zeros((2, cfg.MAP_P, 3), jnp.float32)]        # unused

    trajs, scores = motion_aggregator_moev4_forward(
        prep_params, cfg, features_to_aggregate, pred_scores, bev_features,
        batch_sample_count=3, center_objects_id_to_aggregate=center_ids,
        map_polylines_feature=map_feat, map_valid_mask=map_mask,
        map_polylines_center=map_center)
    trajs, scores = jax.block_until_ready((trajs, scores))

    assert trajs.shape == (3, cfg.NUM_MODES, cfg.NUM_TIMESTAMPS, cfg.NUM_STATES)
    assert scores.shape == (3, cfg.NUM_MODES)

    # Cross-check the fused Pallas forward against a pure-JAX reference that
    # mirrors the PyTorch loop structure.  Tolerance is widened slightly for
    # the bf16-stored streaming weights and the EUP-based mish/softmax recip.
    ref_trajs, ref_scores = reference_forward(
        raw_params, cfg, features_to_aggregate, pred_scores, bev_features,
        batch_sample_count=3, center_objects_id_to_aggregate=center_ids,
        map_polylines_feature=map_feat, map_valid_mask=map_mask,
        map_polylines_center=map_center)
    np.testing.assert_allclose(np.asarray(trajs), np.asarray(ref_trajs),
                               rtol=2e-2, atol=1e-2)
    np.testing.assert_allclose(np.asarray(scores), np.asarray(ref_scores),
                               rtol=2e-2, atol=1e-2)

    print("KERNEL_OK")
</pallas_src>

<mosaic_0001>
module attributes {stable_mosaic.version = 11 : i64} {
  func.func @_mlp3_kernel(%arg0: i32, %arg1: memref<16x40xf32, #tpu.memory_space<vmem>>, %arg2: memref<40x40xf32, #tpu.memory_space<vmem>>, %arg3: memref<1x40xf32, #tpu.memory_space<vmem>>, %arg4: memref<40x40xf32, #tpu.memory_space<vmem>>, %arg5: memref<1x40xf32, #tpu.memory_space<vmem>>, %arg6: memref<40x64xf32, #tpu.memory_space<vmem>>, %arg7: memref<1x64xf32, #tpu.memory_space<vmem>>, %arg8: memref<16x64xf32, #tpu.memory_space<vmem>>) attributes {dimension_semantics = [#tpu.dimension_semantics<parallel>], iteration_bounds = array<i64: 2>, scalar_prefetch = 0 : i64, scratch_operands = 0 : i64, tpu.core_type = #tpu.core_type<tc>, window_params = [{transform_indices = @transform_0, window_bounds = array<i64: 16, 40>}, {pipeline_mode = #tpu.pipeline_mode<synchronous>, transform_indices = @transform_1, window_bounds = array<i64: 40, 40>}, {pipeline_mode = #tpu.pipeline_mode<synchronous>, transform_indices = @transform_2, window_bounds = array<i64: 1, 40>}, {pipeline_mode = #tpu.pipeline_mode<synchronous>, transform_indices = @transform_3, window_bounds = array<i64: 40, 40>}, {pipeline_mode = #tpu.pipeline_mode<synchronous>, transform_indices = @transform_4, window_bounds = array<i64: 1, 40>}, {pipeline_mode = #tpu.pipeline_mode<synchronous>, transform_indices = @transform_5, window_bounds = array<i64: 40, 64>}, {pipeline_mode = #tpu.pipeline_mode<synchronous>, transform_indices = @transform_6, window_bounds = array<i64: 1, 64>}, {transform_indices = @transform_7, window_bounds = array<i64: 16, 64>}]} {
    %c0 = arith.constant 0 : index
    %c0_0 = arith.constant 0 : index
    %0 = vector.load %arg1[%c0, %c0_0] : memref<16x40xf32, #tpu.memory_space<vmem>>, vector<16x40xf32>
    %1 = tpu.iota {dimensions = array<i32: 0>} : vector<16x1xi32>
    %c16_i32 = arith.constant 16 : i32
    %2 = arith.muli %arg0, %c16_i32 : i32
    %3 = vector.broadcast %2 : i32 to vector<16x1xi32>
    %4 = arith.addi %1, %3 : vector<16x1xi32>
    %c30_i32 = arith.constant 30 : i32
    %5 = vector.broadcast %c30_i32 : i32 to vector<16x1xi32>
    %6 = arith.cmpi slt, %4, %5 : vector<16x1xi32>
    %cst = arith.constant 0.000000e+00 : f32
    %7 = vector.shape_cast %6 : vector<16x1xi1> to vector<16x1xi1>
    %8 = vector.broadcast %7 : vector<16x1xi1> to vector<16x40xi1>
    %9 = vector.broadcast %cst : f32 to vector<16x40xf32>
    %10 = arith.select %8, %0, %9 : vector<16x40xi1>, vector<16x40xf32>
    %c0_1 = arith.constant 0 : index
    %c0_2 = arith.constant 0 : index
    %11 = vector.load %arg2[%c0_1, %c0_2] : memref<40x40xf32, #tpu.memory_space<vmem>>, vector<40x40xf32>
    %cst_3 = arith.constant dense<0.000000e+00> : vector<16x40xf32>
    %12 = tpu.matmul %10, %11, %cst_3 {dimension_numbers = #tpu.dot_dimension_numbers<[1], [0], [0], [1], [0, 0, 1, 1], [], []>} : vector<16x40xf32>, vector<40x40xf32>, vector<16x40xf32> -> vector<16x40xf32>
    %c0_4 = arith.constant 0 : index
    %c0_5 = arith.constant 0 : index
    %13 = vector.load %arg3[%c0_4, %c0_5] : memref<1x40xf32, #tpu.memory_space<vmem>>, vector<1x40xf32>
    %14 = vector.broadcast %13 : vector<1x40xf32> to vector<16x40xf32>
    %15 = arith.addf %12, %14 : vector<16x40xf32>
    %16 = math.absf %15 : vector<16x40xf32>
    %cst_6 = arith.constant 0.000000e+00 : f32
    %17 = vector.broadcast %cst_6 : f32 to vector<16x40xf32>
    %18 = arith.subf %17, %16 : vector<16x40xf32>
    %19 = math.exp %18 : vector<16x40xf32>
    %cst_7 = arith.constant 0.000000e+00 : f32
    %20 = vector.broadcast %cst_7 : f32 to vector<16x40xf32>
    %21 = arith.cmpf oge, %15, %20 : vector<16x40xf32>
    %cst_8 = arith.constant 2.000000e+00 : f32
    %22 = vector.broadcast %cst_8 : f32 to vector<16x40xf32>
    %23 = arith.mulf %22, %19 : vector<16x40xf32>
    %cst_9 = arith.constant 1.000000e+00 : f32
    %24 = vector.broadcast %cst_9 : f32 to vector<16x40xf32>
    %25 = arith.addf %24, %23 : vector<16x40xf32>
    %cst_10 = arith.constant 2.000000e+00 : f32
    %26 = vector.broadcast %cst_10 : f32 to vector<16x40xf32>
    %27 = arith.addf %19, %26 : vector<16x40xf32>
    %28 = arith.mulf %19, %27 : vector<16x40xf32>
    %29 = arith.select %21, %25, %28 : vector<16x40xi1>, vector<16x40xf32>
    %cst_11 = arith.constant 0.000000e+00 : f32
    %30 = vector.broadcast %cst_11 : f32 to vector<16x40xf32>
    %31 = arith.cmpf oge, %15, %30 : vector<16x40xf32>
    %cst_12 = arith.constant 2.000000e+00 : f32
    %32 = vector.broadcast %cst_12 : f32 to vector<16x40xf32>
    %33 = arith.mulf %32, %19 : vector<16x40xf32>
    %34 = arith.mulf %33, %19 : vector<16x40xf32>
    %cst_13 = arith.constant 2.000000e+00 : f32
    %35 = vector.broadcast %cst_13 : f32 to vector<16x40xf32>
    %36 = arith.select %31, %34, %35 : vector<16x40xi1>, vector<16x40xf32>
    %37 = arith.addf %29, %36 : vector<16x40xf32>
    %38 = arith.mulf %15, %29 : vector<16x40xf32>
    %39 = tpu.reciprocal %37 {approx = true} : vector<16x40xf32> -> vector<16x40xf32>
    %40 = arith.mulf %37, %39 : vector<16x40xf32>
    %cst_14 = arith.constant 2.000000e+00 : f32
    %41 = vector.broadcast %cst_14 : f32 to vector<16x40xf32>
    %42 = arith.subf %41, %40 : vector<16x40xf32>
    %43 = arith.mulf %39, %42 : vector<16x40xf32>
    %44 = arith.mulf %38, %43 : vector<16x40xf32>
    %c0_15 = arith.constant 0 : index
    %c0_16 = arith.constant 0 : index
    %45 = vector.load %arg4[%c0_15, %c0_16] : memref<40x40xf32, #tpu.memory_space<vmem>>, vector<40x40xf32>
    %cst_17 = arith.constant dense<0.000000e+00> : vector<16x40xf32>
    %46 = tpu.matmul %44, %45, %cst_17 {dimension_numbers = #tpu.dot_dimension_numbers<[1], [0], [0], [1], [0, 0, 1, 1], [], []>} : vector<16x40xf32>, vector<40x40xf32>, vector<16x40xf32> -> vector<16x40xf32>
    %c0_18 = arith.constant 0 : index
    %c0_19 = arith.constant 0 : index
    %47 = vector.load %arg5[%c0_18, %c0_19] : memref<1x40xf32, #tpu.memory_space<vmem>>, vector<1x40xf32>
    %48 = vector.broadcast %47 : vector<1x40xf32> to vector<16x40xf32>
    %49 = arith.addf %46, %48 : vector<16x40xf32>
    %50 = math.absf %49 : vector<16x40xf32>
    %cst_20 = arith.constant 0.000000e+00 : f32
    %51 = vector.broadcast %cst_20 : f32 to vector<16x40xf32>
    %52 = arith.subf %51, %50 : vector<16x40xf32>
    %53 = math.exp %52 : vector<16x40xf32>
    %cst_21 = arith.constant 0.000000e+00 : f32
    %54 = vector.broadcast %cst_21 : f32 to vector<16x40xf32>
    %55 = arith.cmpf oge, %49, %54 : vector<16x40xf32>
    %cst_22 = arith.constant 2.000000e+00 : f32
    %56 = vector.broadcast %cst_22 : f32 to vector<16x40xf32>
    %57 = arith.mulf %56, %53 : vector<16x40xf32>
    %cst_23 = arith.constant 1.000000e+00 : f32
    %58 = vector.broadcast %cst_23 : f32 to vector<16x40xf32>
    %59 = arith.addf %58, %57 : vector<16x40xf32>
    %cst_24 = arith.constant 2.000000e+00 : f32
    %60 = vector.broadcast %cst_24 : f32 to vector<16x40xf32>
    %61 = arith.addf %53, %60 : vector<16x40xf32>
    %62 = arith.mulf %53, %61 : vector<16x40xf32>
    %63 = arith.select %55, %59, %62 : vector<16x40xi1>, vector<16x40xf32>
    %cst_25 = arith.constant 0.000000e+00 : f32
    %64 = vector.broadcast %cst_25 : f32 to vector<16x40xf32>
    %65 = arith.cmpf oge, %49, %64 : vector<16x40xf32>
    %cst_26 = arith.constant 2.000000e+00 : f32
    %66 = vector.broadcast %cst_26 : f32 to vector<16x40xf32>
    %67 = arith.mulf %66, %53 : vector<16x40xf32>
    %68 = arith.mulf %67, %53 : vector<16x40xf32>
    %cst_27 = arith.constant 2.000000e+00 : f32
    %69 = vector.broadcast %cst_27 : f32 to vector<16x40xf32>
    %70 = arith.select %65, %68, %69 : vector<16x40xi1>, vector<16x40xf32>
    %71 = arith.addf %63, %70 : vector<16x40xf32>
    %72 = arith.mulf %49, %63 : vector<16x40xf32>
    %73 = tpu.reciprocal %71 {approx = true} : vector<16x40xf32> -> vector<16x40xf32>
    %74 = arith.mulf %71, %73 : vector<16x40xf32>
    %cst_28 = arith.constant 2.000000e+00 : f32
    %75 = vector.broadcast %cst_28 : f32 to vector<16x40xf32>
    %76 = arith.subf %75, %74 : vector<16x40xf32>
    %77 = arith.mulf %73, %76 : vector<16x40xf32>
    %78 = arith.mulf %72, %77 : vector<16x40xf32>
    %c0_29 = arith.constant 0 : index
    %c0_30 = arith.constant 0 : index
    %79 = vector.load %arg6[%c0_29, %c0_30] : memref<40x64xf32, #tpu.memory_space<vmem>>, vector<40x64xf32>
    %cst_31 = arith.constant dense<0.000000e+00> : vector<16x64xf32>
    %80 = tpu.matmul %78, %79, %cst_31 {dimension_numbers = #tpu.dot_dimension_numbers<[1], [0], [0], [1], [0, 0, 1, 1], [], []>} : vector<16x40xf32>, vector<40x64xf32>, vector<16x64xf32> -> vector<16x64xf32>
    %c0_32 = arith.constant 0 : index
    %c0_33 = arith.constant 0 : index
    %81 = vector.load %arg7[%c0_32, %c0_33] : memref<1x64xf32, #tpu.memory_space<vmem>>, vector<1x64xf32>
    %82 = vector.broadcast %81 : vector<1x64xf32> to vector<16x64xf32>
    %83 = arith.addf %80, %82 : vector<16x64xf32>
    %c0_34 = arith.constant 0 : index
    %c0_35 = arith.constant 0 : index
    %84 = vector.load %arg8[%c0_34, %c0_35] : memref<16x64xf32, #tpu.memory_space<vmem>>, vector<16x64xf32>
    tpu.vector_store %arg8[%c0_34, %c0_35], %83 {strides = array<i32>} : memref<16x64xf32, #tpu.memory_space<vmem>>, vector<16x64xf32>,
    return
  }
  func.func @transform_0(%arg0: i32) -> (i32, i32) {
    %c0_i32 = arith.constant 0 : i32
    %c0_i32_0 = arith.constant 0 : i32
    return %arg0, %c0_i32 : i32, i32
  }
  func.func @transform_1(%arg0: i32) -> (i32, i32) {
    %c0_i32 = arith.constant 0 : i32
    %c0_i32_0 = arith.constant 0 : i32
    %c0_i32_1 = arith.constant 0 : i32
    return %c0_i32, %c0_i32_0 : i32, i32
  }
  func.func @transform_2(%arg0: i32) -> (i32, i32) {
    %c0_i32 = arith.constant 0 : i32
    %c0_i32_0 = arith.constant 0 : i32
    %c0_i32_1 = arith.constant 0 : i32
    return %c0_i32, %c0_i32_0 : i32, i32
  }
  func.func @transform_3(%arg0: i32) -> (i32, i32) {
    %c0_i32 = arith.constant 0 : i32
    %c0_i32_0 = arith.constant 0 : i32
    %c0_i32_1 = arith.constant 0 : i32
    return %c0_i32, %c0_i32_0 : i32, i32
  }
  func.func @transform_4(%arg0: i32) -> (i32, i32) {
    %c0_i32 = arith.constant 0 : i32
    %c0_i32_0 = arith.constant 0 : i32
    %c0_i32_1 = arith.constant 0 : i32
    return %c0_i32, %c0_i32_0 : i32, i32
  }
  func.func @transform_5(%arg0: i32) -> (i32, i32) {
    %c0_i32 = arith.constant 0 : i32
    %c0_i32_0 = arith.constant 0 : i32
    %c0_i32_1 = arith.constant 0 : i32
    return %c0_i32, %c0_i32_0 : i32, i32
  }
  func.func @transform_6(%arg0: i32) -> (i32, i32) {
    %c0_i32 = arith.constant 0 : i32
    %c0_i32_0 = arith.constant 0 : i32
    %c0_i32_1 = arith.constant 0 : i32
    return %c0_i32, %c0_i32_0 : i32, i32
  }
  func.func @transform_7(%arg0: i32) -> (i32, i32) {
    %c0_i32 = arith.constant 0 : i32
    %c0_i32_0 = arith.constant 0 : i32
    return %arg0, %c0_i32 : i32, i32
  }
}

</mosaic_0001>

<bundles_post_ra>
// kernel: tpu_custom_call.1
= control target key start
LH: loop header
LB: loop body
LE: loop exit
PB: predicated region body
PF: predicated region fallthrough
CT: control target
= control target key end

     0   :  { %12 = vsyncpa [#allocation3], 0  ;;  %s1578_s0 = inlined_call_operand.hbm [shape: f32[30,40], index: 0, kind: input, shape index: {}]   ;;  %s1579_s1 = inlined_call_operand.hbm [shape: f32[40,40], index: 1, kind: input, shape index: {}]   ;;  %s1580_s2 = inlined_call_operand.vmem [shape: f32[1,40], index: 2, kind: input, shape index: {}]   ;;  %s1581_s3 = inlined_call_operand.hbm [shape: f32[40,40], index: 3, kind: input, shape index: {}]   ;;  %s1582_s4 = inlined_call_operand.vmem [shape: f32[1,40], index: 4, kind: input, shape index: {}]   ;;  %s1583_s5 = inlined_call_operand.hbm [shape: f32[40,64], index: 5, kind: input, shape index: {}]   ;;  %s1584_s6 = inlined_call_operand.vmem [shape: f32[1,64], index: 6, kind: input, shape index: {}]   ;;  %s1585_s7 = inlined_call_operand.hbm [shape: f32[30,64], index: 7, kind: output, shape index: {}]  }
   0x1   :  { %14 = vsyncpa [#allocation3 + $0x1], 0 }
   0x2   :  { %15 = vsyncpa [#allocation6], 0 }
   0x3   :  { %16 = vsyncpa [#allocation9], 0 }
   0x4   :  { %17 = vsyncpa [#allocation4], 0 }
   0x5   :  { %19 = vsyncpa [#allocation4 + $0x1], 0  ;;  %s1287_s24 = smov 0   ;;  %s1289_s25 = smov 0  }
   0x6   :  { %s1291_s26 = smov 0   ;;  %s1293_s27 = smov 0  }
   0x7 LB: > { %s1308_s28 = sadd.s32 4294967295, %s1236_s27   ;;  %s835_s29 = sadd.s32 4294967294, %s1236_s27   ;;  %s1236_s27 = sphi %s1293_s27, %s1611_s27   ;;  %s1232_s26 = sphi %s1291_s26, %s1610_s26   ;;  %s1228_s25 = sphi %s1289_s25, %s1609_s25   ;;  %s1224_s24 = sphi %s1287_s24, %s1608_s24  }
   0x8   : > { %p45_p0 = scmp.ne.s32.totalorder %s1228_s25, %s1224_s24  ;;  %p1586_p1 = scmp.eq.s32.totalorder %s1308_s28, 0 }
   0x9   : > { %p201_p3 = scmp.eq.s32.totalorder %s835_s29, 1  ;;  %p836_p5 = scmp.ge.s32.totalorder %s1236_s27, 1 }
   0xa   : > { %p1317_p4 = por %p1586_p1, %p45_p0  ;;  %p208_p7 = scmp.lt.s32.totalorder %s1236_s27, 3 }
   0xb   : > { %p1322_p6 = por %p201_p3, %p45_p0  ;;  %s1238_s10 = smov [#allocation5]  }
   0xc   : > { %s1590_s30 = scalar_select %p1317_p4, 1, 0 }
   0xd   : > { %s1591_s8 = scalar_select %p1322_p6, 1, 0 }
   0xe   : > { %p1327_p8 = pnand %p836_p5, %p208_p7  ;;  %s220_s11 = sshll.u32 %s1238_s10, 4  ;;  %s1331_s11 = int_to_ptr.vmem [resolvable:$true] %s220_s11 }
   0xf   : > { %1592 = sst [smem:[#allocation15_spill]] %s1591_s8  ;;  %s1239_s13 = smov [#allocation7]  }
  0x10   : > { %s1593_s9 = scalar_select %p1327_p8, 1, 0 }
  0x11   : > { %p967_p9 = pneg %p1327_p8  ;;  %s236_s14 = sshll.u32 %s1239_s13, 4  ;;  %s1342_s14 = int_to_ptr.vmem [resolvable:$true] %s236_s14 }
  0x12   : > { %s1240_s15 = smov [#allocation8]   ;;  %s1048_s19 = scalar_lea.hbm %s1579_s1, 640 }
  0x13   : > { %p1338_p11 = pnand %p967_p9, %p1586_p1  ;;  %s1344_s16 = sshll.u32 %s1240_s15, 4  ;;  %s253_s16 = int_to_ptr.vmem [resolvable:$true] %s1344_s16 }
  0x14   : > { %p1049_p12 = scmp.ne.s32.totalorder %s1579_s1, %s1048_s19  ;;  %p1055_p5 = scmp.lt.u32.totalorder %s1048_s19, %s1579_s1 }
  0x15   : > { %p1354_p13 = pneg %p1338_p11 }
  0x17   : > { %p1051_p0 = pnand %p1354_p13, %p1049_p12 }
  0x19   : > { %p1052_p3 = pneg %p1051_p0 }
  0x1b   : > { %p1057_p7 = pnand %p1055_p5, %p1052_p3 }
  0x1d   : > { %1060 = shalt.err (!%p1057_p7)
}
  0x1e   : > { %s1061_s10 = scalar_lea.vmem %s1331_s11, 640  ;;  %p1069_p2 = scmp.lt.s32.totalorder %s1331_s11, %s1331_s11 }
  0x1f   : > { %p1062_p9 = scmp.ne.s32.totalorder %s1331_s11, %s1061_s10  ;;  %p1070_p6 = scmp.lt.s32.totalorder %s1061_s10, %s1061_s10 }
  0x21   : > { %p1064_p10 = pnand %p1062_p9, %p1354_p13  ;;  %p1071_p12 = por %p1070_p6, %p1069_p2 }
  0x23   : > { %p1065_p1 = pneg %p1064_p10 }
  0x25   : > { %p1072_p0 = pnand %p1071_p12, %p1065_p1 }
  0x27   : > { %1075 = shalt.err (!%p1072_p0)
}
  0x28   : > { %s1241_s13 = smov 128   ;;  %s1242_s15 = smov 8  }
  0x29   : > { %970 = dma.hbm_to_vmem [thread:$0]  (!%p1338_p11), %s1579_s1, 640, %s1331_s11, [#allocation6], %s1241_s13, %s1241_s13, %s1242_s15  }
  0x2a   : > { %s1076_s21 = scalar_lea.hbm %s1581_s3, 640 }
  0x2b   : > { %p1077_p1 = scmp.ne.s32.totalorder %s1581_s3, %s1076_s21  ;;  %p1083_p10 = scmp.lt.u32.totalorder %s1076_s21, %s1581_s3 }
  0x2d   : > { %p1079_p2 = pnand %p1077_p1, %p1354_p13 }
  0x2f   : > { %p1080_p6 = pneg %p1079_p2 }
  0x31   : > { %p1085_p3 = pnand %p1083_p10, %p1080_p6 }
  0x33   : > { %1088 = shalt.err (!%p1085_p3)
}
  0x34   : > { %s1089_s11 = scalar_lea.vmem %s1342_s14, 640  ;;  %p1097_p12 = scmp.lt.s32.totalorder %s1342_s14, %s1342_s14 }
  0x35   : > { %p1090_p5 = scmp.ne.s32.totalorder %s1342_s14, %s1089_s11  ;;  %p1098_p0 = scmp.lt.s32.totalorder %s1089_s11, %s1089_s11 }
  0x37   : > { %p1092_p7 = pnand %p1090_p5, %p1354_p13  ;;  %p1099_p1 = por %p1098_p0, %p1097_p12 }
  0x39   : > { %p1093_p9 = pneg %p1092_p7 }
  0x3b   : > { %p1100_p2 = pnand %p1099_p1, %p1093_p9 }
  0x3d   : > { %1103 = shalt.err (!%p1100_p2)
}
  0x3e   : > { %973 = dma.hbm_to_vmem [thread:$0]  (!%p1338_p11), %s1581_s3, 640, %s1342_s14, [#allocation6], %s1241_s13, %s1241_s13, %s1242_s15  }
  0x3f   : > { %s1104_s20 = scalar_lea.hbm %s1583_s5, 640 }
  0x40   : > { %p1105_p6 = scmp.ne.s32.totalorder %s1583_s5, %s1104_s20  ;;  %p1111_p5 = scmp.lt.u32.totalorder %s1104_s20, %s1583_s5 }
  0x42   : > { %p1107_p10 = pnand %p1105_p6, %p1354_p13 }
  0x44   : > { %p1108_p3 = pneg %p1107_p10 }
  0x46   : > { %p1113_p7 = pnand %p1111_p5, %p1108_p3 }
  0x48   : > { %1116 = shalt.err (!%p1113_p7)
}
  0x49   : > { %s1117_s11 = scalar_lea.vmem %s253_s16, 640  ;;  %p1125_p1 = scmp.lt.s32.totalorder %s253_s16, %s253_s16 }
  0x4a   : > { %p1118_p9 = scmp.ne.s32.totalorder %s253_s16, %s1117_s11  ;;  %p1126_p2 = scmp.lt.s32.totalorder %s1117_s11, %s1117_s11 }
  0x4c   : > { %p1120_p12 = pnand %p1118_p9, %p1354_p13  ;;  %p1127_p4 = por %p1126_p2, %p1125_p1 }
  0x4e   : > { %p1121_p0 = pneg %p1120_p12 }
  0x50   : > { %p1128_p8 = pnand %p1127_p4, %p1121_p0 }
  0x52   : > { %1131 = shalt.err (!%p1128_p8)
}
  0x53   : > { %976 = dma.hbm_to_vmem [thread:$0]  (!%p1338_p11), %s1583_s5, 640, %s253_s16, [#allocation9], %s1241_s13, %s1241_s13, %s1242_s15  }
  0x54   : > { %s1427_s22 = sadd.s32 1, %s1236_s27   ;;  %s32_s17 = sadd.s32 1, %s1232_s26 }
  0x55   : > { %s29_s12 = ssub.s32 %s1236_s27, %s1427_s22  ;;  %p39_p8 = scmp.ne.s32.totalorder %s1232_s26, %s1228_s25 }
  0x56   : > { %p30_p4 = scmp.eq.s32.totalorder %s29_s12, 0  ;;  %p40_p13 = scmp.eq.s32.totalorder %s1236_s27, 0 }
  0x57   : > { %p988_p6 = scmp.lt.s32.totalorder %s1236_s27, 2  ;;  %p1596_p3 = scmp.eq.s32.totalorder %s1308_s28, 1 }
  0x58   : > { %s1437_s18 = scalar_select %p30_p4, %s1232_s26, %s32_s17  }
  0x59   : > { %p41_p10 = por %p40_p13, %p39_p8  ;;  %p1441_p5 = por %p1596_p3, %p39_p8 }
  0x5a   : > { %s269_s20 = sand.u32 1, %s1232_s26   ;;  %s865_s21 = sshll.u32 %s1236_s27, 8 }
  0x5b   : > { %s841_s16 = sshll.u32 %s269_s20, 4  ;;  %s1450_s10 = scalar_lea.hbm %s1578_s0, %s865_s21 }
  0x5c   : > { %s273_s11 = scalar_lea.vmem [#allocation2], %s841_s16  ;;  %p1452_p11 = pnand %p988_p6, %p41_p10 }
  0x5d   : > { %s280_s14 = sshll.u32 %s273_s11, 4  ;;  %s1458_s12 = scalar_lea.sflag [#allocation3], %s269_s20  ;;  %s1456_s14 = int_to_ptr.vmem [resolvable:$true] %s280_s14 }
  0x5e   : > { %s1132_s17 = scalar_lea.hbm %s1450_s10, 256  ;;  %p1134_p9 = pneg %p1452_p11 }
  0x5f   : > { %p1133_p7 = scmp.ne.s32.totalorder %s1450_s10, %s1132_s17  ;;  %s1137_s23 = scalar_lea.hbm %s1578_s0, 512 }
  0x60   : > { %p1138_p1 = scmp.lt.u32.totalorder %s1450_s10, %s1578_s0  ;;  %p1139_p2 = scmp.lt.u32.totalorder %s1137_s23, %s1132_s17 }
  0x61   : > { %p1135_p12 = pnand %p1134_p9, %p1133_p7  ;;  %p1141_p8 = scmp.lt.u32.totalorder %s1132_s17, %s1450_s10 }
  0x62   : > { %p1140_p4 = por %p1139_p2, %p1138_p1 }
  0x63   : > { %p1136_p0 = pneg %p1135_p12 }
  0x64   : > { %p1142_p13 = por %p1141_p8, %p1140_p4 }
  0x66   : > { %p1143_p6 = pnand %p1142_p13, %p1136_p0 }
  0x68   : > { %1146 = shalt.err (!%p1143_p6)
}
  0x69   : > { %s1147_s20 = scalar_lea.vmem %s1456_s14, 256  ;;  %s1243_s21 = smov [#allocation2]  }
  0x6a   : > { %p1148_p10 = scmp.ne.s32.totalorder %s1456_s14, %s1147_s20  ;;  %s1152_s16 = sshll.u32 %s1243_s21, 4  ;;  %s1153_s16 = int_to_ptr.vmem [resolvable:$false] %s1152_s16 }
  0x6b   : > { %s1154_s29 = scalar_lea.vmem %s1153_s16, 512  ;;  %p1155_p12 = scmp.lt.s32.totalorder %s1456_s14, %s1153_s16 }
  0x6c   : > { %p1150_p3 = pnand %p1148_p10, %p1134_p9  ;;  %p1156_p1 = scmp.lt.s32.totalorder %s1154_s29, %s1147_s20 }
  0x6e   : > { %p1151_p7 = pneg %p1150_p3  ;;  %p1157_p2 = por %p1156_p1, %p1155_p12 }
  0x70   : > { %p1158_p4 = pnand %p1157_p2, %p1151_p7 }
  0x72   : > { %1161 = shalt.err (!%p1158_p4)
}
  0x73   : > { %980 = dma.hbm_to_vmem [thread:$0]  (!%p1452_p11), %s1450_s10, 256, %s1456_s14, %s1458_s12, %s1241_s13, %s1241_s13, %s1242_s15  }
  0x74   : > { %p1599_p9 = scmp.ne.s32.totalorder %s1593_s9, 0 }
  0x75   : > { %s1492_s17 = sand.u32 (!%p1599_p9), 1, %s1228_s25   ;;  %p1600_p0 = scmp.ne.s32.totalorder (!%p1599_p9), %s1590_s30, 0 }
  0x76   : > { %292 = sbr.rel (%p1599_p9) target bundleno = 894 (0x37e), region = 48  ;;  %s845_s23 = sshll.u32 (!%p1599_p9), %s1492_s17, 4 }
  0x77   : > { %s295_s11 = scalar_lea.sflag (!%p1599_p9), [#allocation3], %s1492_s17  ;;  %s298_s8 = scalar_lea.vmem (!%p1599_p9), [#allocation2], %s845_s23 }
  0x7d   : > { %1207 = dma.done.wait (%p1600_p0), %s295_s11, 256  }
  0x7e   : > { %1209 = vsyncadd (%p1600_p0), %s295_s11, 4294967040  ;;  %p1601_p11 = scmp.eq.s32.totalorder %s1308_s28, 0 }
  0x80   : > { %1211 = dma.done.wait (%p1601_p11), [#allocation6], 1280   ;;  %p1602_p8 = pmov %p1601_p11 }
  0x82   : > { %1213 = vsyncadd (%p1602_p8), [#allocation6], 4294966016  ;;  %p1603_p13 = pmov %p1602_p8 }
  0x83   : > { %p1604_p6 = pmov %p1602_p8 }
  0x84   : > { %1215 = dma.done.wait (%p1603_p13), [#allocation9], 640  }
  0x85   : > { %1217 = vsyncadd (%p1604_p6), [#allocation9], 4294966656  ;;  %v345_v0 = vlaneseq  ;;  %s850_s9 = sshll.u32 %s1308_s28, 4  ;;  %v360_v5 = vld [vmem:[#allocation5] sm:$0xff]  ;;  %v361_v6 = vld [vmem:[#allocation5 + $0x8] sm:$0xff]  ;;  %vm372_vm1 = vcmask 326656  }
  0x86   : > { %v349_v1 = vstv %s850_s9  ;;  %v362_v7 = vld [vmem:[#allocation5 + $0x10] sm:$0xff]  ;;  %v927_v8 = vpack.c.bf16 %v361_v6, %v360_v5  ;;  %v363_v9 = vld [vmem:[#allocation5 + $0x18] sm:$0xff]  ;;  %v364_v14 = vld [vmem:[#allocation5 + $0x20] sm:$0xff]  ;;  %s340_s14 = scalar_lea.vmem [#allocation10], %s845_s23  ;;  %s866_s16 = sshll.u32 %s1308_s28, 8  ;;  %vm716_vm7 = vcmask 523264  }
  0x87   : > { %v346_v2 = vshrl.u32 %v345_v0, 7  ;;  %v343_v10 = vld [vmem:[%s298_s8] sm:$0xff]  ;;  %v931_v11 = vpack.c.bf16 %v363_v9, %v362_v7  ;;  %v344_v15 = vld [vmem:[%s298_s8 + $0x8] sm:$0xff]  ;;  %s733_s12 = sshll.u32 %s340_s14, 4  ;;  %s1534_s23 = scalar_lea.hbm %s1585_s7, %s866_s16  ;;  %s1529_s12 = int_to_ptr.vmem [resolvable:$true] %s733_s12 }
  0x88   : > { %928 = vmatprep.subr.bf16.mxu0 %v927_v8  ;;  %v492_v17 = vld [vmem:[#allocation7] sm:$0xff]  ;;  %v493_v18 = vld [vmem:[#allocation7 + $0x8] sm:$0xff]  ;;  %v494_v20 = vld [vmem:[#allocation7 + $0x10] sm:$0xff]  ;;  %s720_s8 = scalar_lea.sflag [#allocation4], %s1492_s17  ;;  %s1162_s9 = scalar_lea.vmem %s1529_s12, 256 }
  0x89   : > { %v350_v3 = vadd.s32 %v349_v1, %v346_v2  ;;  %v347_v4 = vadd.s32 8, %v346_v2  ;;  %930 = vmatpush3.bf16.msra.mxu0 %v927_v8  ;;  %v935_v19 = vpack.c.bf16 %v493_v18, %v492_v17  ;;  %v495_v21 = vld [vmem:[#allocation7 + $0x18] sm:$0xff]  ;;  %v496_v23 = vld [vmem:[#allocation7 + $0x20] sm:$0xff]  ;;  %v624_v2 = vld [vmem:[#allocation8 + $0x8] sm:$0xff]  ;;  %p1163_p10 = scmp.ne.s32.totalorder %s1529_s12, %s1162_s9  ;;  %s1244_s28 = smov [#allocation10]  }
  0x8a   : > { %932 = vmatprep.subr.bf16.mxu0 %v931_v11  ;;  %v939_v22 = vpack.c.bf16 %v495_v21, %v494_v20  ;;  %v851_v24 = vld [vmem:[%s1580_s2] ss:$0 sm:$0xff]  ;;  %v626_v5 = vld [vmem:[#allocation8 + $0x18] sm:$0xff]  ;;  %v627_v7 = vld [vmem:[#allocation8 + $0x20] sm:$0xff]  ;;  %s1166_s30 = sshll.u32 %s1244_s28, 4  ;;  %s1167_s30 = int_to_ptr.vmem [resolvable:$false] %s1166_s30 }
  0x8b   : > { %vm352_vm0 = vcmp.lt.s32.totalorder %v350_v3, 30  ;;  %v351_v13 = vadd.s32 %v349_v1, %v347_v4  ;;  %936 = vmatprep.subr.bf16.mxu1 %v935_v19  ;;  %v623_v1 = vld [vmem:[#allocation8] sm:$0xff]  ;;  %v625_v4 = vld [vmem:[#allocation8 + $0x10] sm:$0xff]  ;;  %p1164_p3 = pnand %p1163_p10, %p1441_p5  ;;  %s1168_s13 = scalar_lea.vmem %s1167_s30, 512 }
  0x8c   : > { %v358_v12 = vsel %vm352_vm0, %v343_v10, 0.0  ;;  %938 = vmatpush3.bf16.msra.mxu1 %v935_v19  ;;  %v943_v3 = vpack.c.bf16 %v624_v2, %v623_v1  ;;  %v947_v6 = vpack.c.bf16 %v626_v5, %v625_v4  ;;  %v854_v8 = vld [vmem:[%s1582_s4] ss:$0 sm:$0xff]  ;;  %p1169_p12 = scmp.lt.s32.totalorder %s1529_s12, %s1167_s30  ;;  %p1170_p1 = scmp.lt.s32.totalorder %s1168_s13, %s1162_s9 }
  0x8d   : > { %898 = vmatprep.mubr.msk.f32.mxu0 %vm372_vm1, %v358_v12  ;;  %vm353_vm2 = vcmp.lt.s32.totalorder %v351_v13, 30  ;;  %934 = vmatpush3.bf16.msra.mxu0 %v931_v11  ;;  %p1165_p7 = pneg %p1164_p3 }
  0x8e   : > { %896 = vmatprep.subr.mxu0 %v364_v14  ;;  %v359_v16 = vsel %vm353_vm2, %v344_v15, 0.0  ;;  %940 = vmatprep.subr.bf16.mxu1 %v939_v22  ;;  %p1171_p2 = por %p1170_p1, %p1169_p12 }
  0x90   : > { %942 = vmatpush3.bf16.msra.mxu1 %v939_v22  ;;  %p1172_p4 = pnand %p1171_p2, %p1165_p7 }
  0x91   : > { %897 = vmatpush3.msra.mxu0 %v364_v14  ;;  %909 = vmatprep.subr.mxu1 %v496_v23 }
  0x92   : > { %899 = vmatmul.mubr.msk.f32.vlgmr.msra.gmra.mrb[0].mxu0 %vm372_vm1, %v359_v16  ;;  %944 = vmatprep.subr.bf16.mxu0 %v943_v3 }
  0x93   : > { %946 = vmatpush3.bf16.msra.mxu0 %v943_v3 }
  0x94   : > { %910 = vmatpush3.msra.mxu1 %v496_v23  ;;  %948 = vmatprep.subr.bf16.mxu0 %v947_v6 }
  0x97   : > { %950 = vmatpush3.bf16.msra.mxu0 %v947_v6 }
  0x98   : > { %922 = vmatprep.subr.mxu0 %v627_v7 }
  0x9b   : > { %923 = vmatpush3.msra.mxu0 %v627_v7 }
 0x165   : > { %v900_v25 = vpop.f32.mrb[0].mxu0 }
 0x166   : > { %v451_v26 = vadd.f32 %v900_v25, %v851_v24  ;;  %v445_v27 = vpop.f32.mrb[1].mxu0 }
 0x167   : > { %v446_v28 = vadd.f32 %v851_v24, %v445_v27 }
 0x168   : > { %v455_v29 = vand.u32 2147483647, %v451_v26  ;;  %vm463_vm3 = vcmp.ge.f32.partialorder %v451_v26, 0.0 }
 0x169   : > { %v454_v30 = vand.u32 2147483647, %v446_v28  ;;  %vm462_vm4 = vcmp.ge.f32.partialorder %v446_v28, 0.0 }
 0x16a   : > { %v457_v31 = vsub.f32 0.0, %v455_v29 }
 0x16b   : > { %v456_v32 = vsub.f32 0.0, %v454_v30 }
 0x16c   : > { %v460_v33 = vmul.f32 1.442695, %v457_v31 }
 0x16d   : > { %v458_v34 = vmul.f32 1.442695, %v456_v32 }
 0x16e   : > { %1032 = vpow2.f32 %v460_v33 }
 0x16f   : > { %1034 = vpow2.f32 %v458_v34 }
 0x178   : > { %v1033_v35 = vpop.eup %1032 }
 0x179   : > { %v1035_v36 = vpop.eup %1034  ;;  %v465_v37 = vmul.f32 2.0, %v1033_v35  ;;  %v469_v38 = vadd.f32 2.0, %v1033_v35 }
 0x17a   : > { %v464_v39 = vmul.f32 2.0, %v1035_v36  ;;  %v468_v40 = vadd.f32 2.0, %v1035_v36 }
 0x17b   : > { %v467_v41 = vadd.f32 1.0, %v465_v37  ;;  %v471_v42 = vmul.f32 %v1033_v35, %v469_v38  ;;  %v475_v43 = vmul.f32 %v1033_v35, %v465_v37 }
 0x17c   : > { %v474_v44 = vmul.f32 %v1035_v36, %v464_v39  ;;  %v466_v45 = vadd.f32 1.0, %v464_v39  ;;  %v470_v46 = vmul.f32 %v1035_v36, %v468_v40 }
 0x17d   : > { %v473_v47 = vsel %vm463_vm3, %v467_v41, %v471_v42  ;;  %v477_v48 = vsel %vm463_vm3, %v475_v43, 2.0 }
 0x17e   : > { %v479_v49 = vadd.f32 %v477_v48, %v473_v47  ;;  %v476_v50 = vsel %vm462_vm4, %v474_v44, 2.0  ;;  %v472_v51 = vsel %vm462_vm4, %v466_v45, %v470_v46  ;;  %v481_v62 = vmul.f32 %v473_v47, %v451_v26 }
 0x17f   : > { %v478_v52 = vadd.f32 %v476_v50, %v472_v51  ;;  %v480_v60 = vmul.f32 %v472_v51, %v446_v28 }
 0x180   : > { %1036 = vrcp.f32 %v479_v49 }
 0x181   : > { %1038 = vrcp.f32 %v478_v52 }
 0x18a   : > { %v1037_v53 = vpop.eup %1036 }
 0x18b   : > { %v1039_v54 = vpop.eup %1038  ;;  %v485_v55 = vmul.f32 %v1037_v53, %v479_v49  ;;  %v857_v49 = vld [vmem:[%s1584_s6] ss:$0 sm:$0xff] }
 0x18c   : > { %v484_v56 = vmul.f32 %v1039_v54, %v478_v52 }
 0x18d   : > { %v487_v57 = vsub.f32 2.0, %v485_v55 }
 0x18e   : > { %v486_v58 = vsub.f32 2.0, %v484_v56 }
 0x18f   : > { %v489_v59 = vmul.f32 %v1037_v53, %v487_v57 }
 0x190   : > { %v488_v61 = vmul.f32 %v1039_v54, %v486_v58 }
 0x191   : > { %v491_v0 = vmul.f32 %v489_v59, %v481_v62 }
 0x192   : > { %v490_v63 = vmul.f32 %v488_v61, %v480_v60 }
 0x194   : > { %911 = vmatprep.mubr.msk.f32.mxu1 %vm372_vm1, %v490_v63 }
 0x195   : > { %912 = vmatmul.mubr.msk.f32.vlgmr.msra.gmra.mrb[0].mxu1 %vm372_vm1, %v491_v0 }
 0x268   : > { %v913_v9 = vpop.f32.mrb[0].mxu1 }
 0x269   : > { %v582_v10 = vadd.f32 %v913_v9, %v854_v8  ;;  %v576_v11 = vpop.f32.mrb[1].mxu1 }
 0x26a   : > { %v577_v12 = vadd.f32 %v854_v8, %v576_v11 }
 0x26b   : > { %v586_v13 = vand.u32 2147483647, %v582_v10  ;;  %vm594_vm5 = vcmp.ge.f32.partialorder %v582_v10, 0.0 }
 0x26c   : > { %v585_v14 = vand.u32 2147483647, %v577_v12  ;;  %vm593_vm6 = vcmp.ge.f32.partialorder %v577_v12, 0.0 }
 0x26d   : > { %v588_v15 = vsub.f32 0.0, %v586_v13 }
 0x26e   : > { %v587_v16 = vsub.f32 0.0, %v585_v14 }
 0x26f   : > { %v591_v17 = vmul.f32 1.442695, %v588_v15 }
 0x270   : > { %v589_v18 = vmul.f32 1.442695, %v587_v16 }
 0x271   : > { %1040 = vpow2.f32 %v591_v17 }
 0x272   : > { %1042 = vpow2.f32 %v589_v18 }
 0x27b   : > { %v1041_v19 = vpop.eup %1040 }
 0x27c   : > { %v1043_v20 = vpop.eup %1042  ;;  %v596_v21 = vmul.f32 2.0, %v1041_v19  ;;  %v600_v22 = vadd.f32 2.0, %v1041_v19 }
 0x27d   : > { %v595_v23 = vmul.f32 2.0, %v1043_v20  ;;  %v599_v24 = vadd.f32 2.0, %v1043_v20 }
 0x27e   : > { %v598_v25 = vadd.f32 1.0, %v596_v21  ;;  %v602_v26 = vmul.f32 %v1041_v19, %v600_v22  ;;  %v606_v27 = vmul.f32 %v1041_v19, %v596_v21 }
 0x27f   : > { %v597_v28 = vadd.f32 1.0, %v595_v23  ;;  %v601_v29 = vmul.f32 %v1043_v20, %v599_v24  ;;  %v605_v30 = vmul.f32 %v1043_v20, %v595_v23 }
 0x280   : > { %v604_v31 = vsel %vm594_vm5, %v598_v25, %v602_v26  ;;  %v608_v32 = vsel %vm594_vm5, %v606_v27, 2.0 }
 0x281   : > { %v610_v33 = vadd.f32 %v608_v32, %v604_v31  ;;  %v603_v34 = vsel %vm593_vm6, %v597_v28, %v601_v29  ;;  %v607_v35 = vsel %vm593_vm6, %v605_v30, 2.0  ;;  %v612_v46 = vmul.f32 %v604_v31, %v582_v10 }
 0x282   : > { %v609_v36 = vadd.f32 %v607_v35, %v603_v34  ;;  %v611_v44 = vmul.f32 %v603_v34, %v577_v12 }
 0x283   : > { %1044 = vrcp.f32 %v610_v33 }
 0x284   : > { %1046 = vrcp.f32 %v609_v36 }
 0x28d   : > { %v1045_v37 = vpop.eup %1044 }
 0x28e   : > { %v1047_v38 = vpop.eup %1046  ;;  %v616_v39 = vmul.f32 %v1045_v37, %v610_v33 }
 0x28f   : > { %v615_v40 = vmul.f32 %v1047_v38, %v609_v36 }
 0x290   : > { %v618_v41 = vsub.f32 2.0, %v616_v39 }
 0x291   : > { %v617_v42 = vsub.f32 2.0, %v615_v40 }
 0x292   : > { %v620_v43 = vmul.f32 %v1045_v37, %v618_v41 }
 0x293   : > { %v619_v45 = vmul.f32 %v1047_v38, %v617_v42 }
 0x294   : > { %v622_v48 = vmul.f32 %v620_v43, %v612_v46 }
 0x295   : > { %v621_v47 = vmul.f32 %v619_v45, %v611_v44 }
 0x297   : > { %924 = vmatprep.mubr.msk.f32.mxu0 %vm372_vm1, %v621_v47 }
 0x298   : > { %925 = vmatmul.mubr.msk.f32.vlgmr.msra.gmra.mrb[2].mxu0 %vm372_vm1, %v622_v48 }
 0x36b   : > { %v926_v50 = vpop.f32.mrb[2].mxu0 }
 0x36c   : > { %v713_v51 = vadd.f32 %v926_v50, %v857_v49  ;;  %v707_v52 = vpop.f32.mrb[3].mxu0 }
 0x36d   : > { %v708_v53 = vadd.f32 %v857_v49, %v707_v52 }
 0x36e   : > { %718 = vst.msk [vmem:[%s340_s14 + $0x8] sm:$0xff] %vm716_vm7, %v713_v51 }
 0x36f   : > { %717 = vst.msk [vmem:[%s340_s14] sm:$0xff] %vm716_vm7, %v708_v53 }
 0x370   : > { %1175 = shalt.err (!%p1172_p4)
}
 0x371   : > { %s1176_s15 = scalar_lea.hbm %s1534_s23, 256  ;;  %s1180_s20 = scalar_lea.hbm %s1585_s7, 512 }
 0x372   : > { %p1177_p9 = scmp.ne.s32.totalorder %s1534_s23, %s1176_s15  ;;  %p1181_p8 = scmp.lt.u32.totalorder %s1534_s23, %s1585_s7 }
 0x373   : > { %p1182_p13 = scmp.lt.u32.totalorder %s1180_s20, %s1176_s15  ;;  %p1184_p10 = scmp.lt.u32.totalorder %s1176_s15, %s1534_s23 }
 0x374   : > { %p1178_p0 = pnand %p1177_p9, %p1441_p5 }
 0x375   : > { %p1183_p6 = por %p1182_p13, %p1181_p8 }
 0x376   : > { %p1179_p11 = pneg %p1178_p0 }
 0x377   : > { %p1185_p3 = por %p1184_p10, %p1183_p6 }
 0x379   : > { %p1186_p7 = pnand %p1185_p3, %p1179_p11 }
 0x37b   : > { %1189 = shalt.err (!%p1186_p7)
}
 0x37c   : > { %s1245_s29 = smov 128   ;;  %s1246_s11 = smov 8  }
 0x37d   : > { %965 = dma.vmem_to_hbm [thread:$0]  (%p1441_p5), %s1529_s12, 256, %s1534_s23, %s720_s8, %s1245_s29, %s1245_s29, %s1246_s11  }
 0x37e PF: > { %s1605_s9 = sld [smem:[#allocation15_spill]]  ;;  %s748_s28 = sand.u32 1, %s1224_s24  }
 0x37f   : > { %p1607_p1 = scmp.ge.s32.totalorder %s1236_s27, 2  ;;  %s749_s30 = scalar_lea.sflag [#allocation4], %s748_s28 }
 0x384   : > { %p1606_p12 = scmp.ne.s32.totalorder %s1605_s9, 0 }
 0x386   : > { %p982_p2 = pnand %p1607_p1, %p1606_p12 }
 0x388   : > { %1219 = dma.done.wait (!%p982_p2), %s749_s30, 256  }
 0x389   : > { %1221 = vsyncadd (!%p982_p2), %s749_s30, 4294967040  ;;  %p22_p4 = scmp.ge.s32.totalorder %s1427_s22, 4   ;;  %s1608_s24 = smov %s1228_s25 }
 0x38a   : > { %s1609_s25 = smov %s1232_s26  ;;  %s1610_s26 = smov %s1437_s18 }
 0x38b   : > { %s1611_s27 = smov %s1427_s22  ;;  %24 = sbr.rel (!%p22_p4) target bundleno = 7 (0x7), region = 105 }
 0x392   :  { %754 = vsyncpa [#allocation3], 1 }
 0x393   :  { %756 = vsyncpa [#allocation3 + $0x1], 1 }
 0x394   :  { %757 = vsyncpa [#allocation6], 1 }
 0x395   :  { %758 = vsyncpa [#allocation9], 1 }
 0x396   :  { %759 = vsyncpa [#allocation4], 1 }
 0x397   :  { %761 = vsyncpa [#allocation4 + $0x1], 1 }

</bundles_post_ra>
